<compile_context>
chip_gen: v7x
topology: tpu7x:2x2x1
jax: 0.10.0
libtpu: 0.0.40
codegen_flags: <defaults>
</compile_context>

<pallas_src>
import jax
import jax.numpy as jnp
from jax.experimental import pallas as pl
from jax.experimental.pallas import tpu as pltpu

_NEG_BIG = -1e30  # finite "-inf" so online-softmax rescaling never produces NaN


def _round_up(n, m):
    return ((n + m - 1) // m) * m


def _pad2(a, rows, cols):
    return jnp.pad(a, ((0, rows - a.shape[0]), (0, cols - a.shape[1])))


# ----------------------------------------------------------------------------- kernels


def make_logits_stats_kernel(*, tb, n_rows, b_pad):
    """Pass 1: per-batch-tile Linear/ReLU stack + online per-column (max, sum-exp) stats."""
    needs_mask = b_pad > n_rows

    def kernel(x_ref, w0_ref, b0_ref, w1_ref, b1_ref, wh_ref, bh_ref,
               logits_ref, m_ref, l_ref, m_sc, l_sc):
        i = pl.program_id(0)

        @pl.when(i == 0)
        def _():
            m_sc[...] = jnp.full(m_sc.shape, _NEG_BIG, dtype=m_sc.dtype)
            l_sc[...] = jnp.zeros_like(l_sc)

        cdt = w0_ref.dtype  # compute dtype for the MXU (bf16 by default)

        # Layer 0: Linear + ReLU (f32 accumulation, bf16 operands)
        h = jnp.dot(x_ref[...], w0_ref[...], preferred_element_type=jnp.float32) + b0_ref[...]
        h = jnp.maximum(h, 0.0).astype(cdt)
        # Layer 1: Linear + ReLU
        h = jnp.dot(h, w1_ref[...], preferred_element_type=jnp.float32) + b1_ref[...]
        h = jnp.maximum(h, 0.0).astype(cdt)
        # Head: Linear
        logits = jnp.dot(h, wh_ref[...], preferred_element_type=jnp.float32) + bh_ref[...]

        if needs_mask:
            # Padded batch rows must not contribute to softmax(dim=0) statistics.
            row_ids = i * tb + jax.lax.broadcasted_iota(jnp.int32, logits.shape, 0)
            logits = jnp.where(row_ids < n_rows, logits, _NEG_BIG)

        logits_ref[...] = logits

        # Online softmax statistics over the batch (grid) axis, per class column.
        m_prev = m_sc[...]
        m_new = jnp.maximum(m_prev, jnp.max(logits, axis=0, keepdims=True))
        l_sc[...] = l_sc[...] * jnp.exp(m_prev - m_new) + \
            jnp.sum(jnp.exp(logits - m_new), axis=0, keepdims=True)
        m_sc[...] = m_new

        @pl.when(i == pl.num_programs(0) - 1)
        def _():
            m_ref[...] = m_sc[...]
            l_ref[...] = l_sc[...]

    return kernel


def normalize_kernel(m_ref, l_ref, logits_ref, o_ref):
    """Pass 2: softmax(dim=0) normalization; reciprocal goes to the EUP slot."""
    inv_l = pl.reciprocal(l_ref[...], approx=True)
    o_ref[...] = jnp.exp(logits_ref[...] - m_ref[...]) * inv_l


# ----------------------------------------------------------------------------- wrapper


def init_params(key, n_inputs, widths, n_classes):
    """Deterministic init mimicking nn.Linear. Weights stored (in, out); biases (1, out). f32."""
    ks = jax.random.split(key, 6)

    def lin(kw, kb, fan_in, fan_out):
        bound = 1.0 / jnp.sqrt(fan_in)
        w = jax.random.uniform(kw, (fan_in, fan_out), jnp.float32, -bound, bound)
        b = jax.random.uniform(kb, (1, fan_out), jnp.float32, -bound, bound)
        return w, b

    w0, b0 = lin(ks[0], ks[1], n_inputs, widths[0])
    w1, b1 = lin(ks[2], ks[3], widths[0], widths[1])
    wh, bh = lin(ks[4], ks[5], widths[1], n_classes)
    return {"w0": w0, "b0": b0, "w1": w1, "b1": b1, "wh": wh, "bh": bh}


def prepare_params(params, compute_dtype=jnp.bfloat16):
    """One-time padding to lane-native (128-multiple) shapes + bf16 cast of matmul weights."""
    def padw(w):
        r = _round_up(w.shape[0], 128)
        c = _round_up(w.shape[1], 128)
        return _pad2(w, r, c).astype(compute_dtype)

    def padb(b):
        c = _round_up(b.shape[1], 128)
        return _pad2(b, 1, c).astype(jnp.float32)

    return {
        "w0": padw(params["w0"]), "b0": padb(params["b0"]),
        "w1": padw(params["w1"]), "b1": padb(params["b1"]),
        "wh": padw(params["wh"]), "bh": padb(params["bh"]),
    }


def mlp_forward(x, prepared, n_classes, *, tb_rows=512):
    """x: (B, n_inputs) f32. prepared: output of prepare_params. Returns (B, n_classes) f32."""
    B, n_in = x.shape
    cdt = prepared["w0"].dtype
    d_pad = prepared["w0"].shape[0]
    h0 = prepared["w0"].shape[1]
    h1 = prepared["w1"].shape[1]
    c_pad = prepared["wh"].shape[1]

    tb = min(int(tb_rows), _round_up(B, 8))       # batch tile (sublane multiple of 8 for f32)
    b_pad = _round_up(B, tb)
    num_tiles = b_pad // tb

    x_pad = _pad2(x, b_pad, d_pad).astype(cdt)

    kernel_a = make_logits_stats_kernel(tb=tb, n_rows=B, b_pad=b_pad)

    # Pass 1: logits + per-column softmax statistics (batch axis carries state -> "arbitrary").
    logits, m, l = pl.pallas_call(
        kernel_a,
        out_shape=(
            jax.ShapeDtypeStruct((b_pad, c_pad), jnp.float32),
            jax.ShapeDtypeStruct((1, c_pad), jnp.float32),
            jax.ShapeDtypeStruct((1, c_pad), jnp.float32),
        ),
        grid_spec=pltpu.PrefetchScalarGridSpec(
            num_scalar_prefetch=0,
            grid=(num_tiles,),
            in_specs=[
                pl.BlockSpec((tb, d_pad), lambda i: (i, 0)),    # x tile
                pl.BlockSpec((d_pad, h0), lambda i: (0, 0)),    # w0 (resident)
                pl.BlockSpec((1, h0), lambda i: (0, 0)),        # b0
                pl.BlockSpec((h0, h1), lambda i: (0, 0)),       # w1
                pl.BlockSpec((1, h1), lambda i: (0, 0)),        # b1
                pl.BlockSpec((h1, c_pad), lambda i: (0, 0)),    # wh
                pl.BlockSpec((1, c_pad), lambda i: (0, 0)),     # bh
            ],
            out_specs=[
                pl.BlockSpec((tb, c_pad), lambda i: (i, 0)),    # logits tile
                pl.BlockSpec((1, c_pad), lambda i: (0, 0)),     # column max (accumulator)
                pl.BlockSpec((1, c_pad), lambda i: (0, 0)),     # column sum-exp (accumulator)
            ],
            scratch_shapes=[
                pltpu.VMEM((1, c_pad), jnp.float32),
                pltpu.VMEM((1, c_pad), jnp.float32),
            ],
        ),
        compiler_params=pltpu.CompilerParams(dimension_semantics=("arbitrary",)),
    )(x_pad, prepared["w0"], prepared["b0"], prepared["w1"], prepared["b1"],
      prepared["wh"], prepared["bh"])

    # Pass 2: normalize (independent per batch tile -> "parallel" for v7x megacore).
    out_pad = pl.pallas_call(
        normalize_kernel,
        out_shape=jax.ShapeDtypeStruct((b_pad, c_pad), jnp.float32),
        grid_spec=pltpu.PrefetchScalarGridSpec(
            num_scalar_prefetch=0,
            grid=(num_tiles,),
            in_specs=[
                pl.BlockSpec((1, c_pad), lambda i: (0, 0)),
                pl.BlockSpec((1, c_pad), lambda i: (0, 0)),
                pl.BlockSpec((tb, c_pad), lambda i: (i, 0)),
            ],
            out_specs=pl.BlockSpec((tb, c_pad), lambda i: (i, 0)),
        ),
        compiler_params=pltpu.CompilerParams(dimension_semantics=("parallel",)),
    )(m, l, logits)

    return out_pad[:B, :n_classes]


# ----------------------------------------------------------------------------- main


if __name__ == "__main__":
    # Small shapes consistent with the module (n_layer=2, classification head).
    # B=12 deliberately not a tile multiple so the batch-padding mask path is exercised;
    # tb_rows=8 forces a 2-step batch grid so the online softmax accumulation is exercised.
    B, n_inputs, widths, n_classes = 12, 4, [32, 32], 4

    key = jax.random.PRNGKey(0)
    kx, kp = jax.random.split(key)
    x = jax.random.normal(kx, (B, n_inputs), dtype=jnp.float32)
    params = init_params(kp, n_inputs, widths, n_classes)
    prepared = prepare_params(params, compute_dtype=jnp.bfloat16)

    out = mlp_forward(x, prepared, n_classes, tb_rows=8)
    out = jax.block_until_ready(out)

    # Pure-JAX f32 reference (softmax over dim 0, matching nn.Softmax(0)).
    h = jax.nn.relu(x @ params["w0"] + params["b0"])
    h = jax.nn.relu(h @ params["w1"] + params["b1"])
    ref = jax.nn.softmax(h @ params["wh"] + params["bh"], axis=0)

    assert out.shape == (B, n_classes)
    col_sums = jnp.sum(out, axis=0)  # softmax over dim 0 => each column sums to 1
    assert bool(jnp.allclose(col_sums, jnp.ones_like(col_sums), atol=5e-3)), col_sums
    assert bool(jnp.allclose(out, ref, atol=5e-2)), jnp.max(jnp.abs(out - ref))

    print("KERNEL_OK")
</pallas_src>

<mosaic_0001>
module attributes {stable_mosaic.version = 11 : i64} {
  func.func @kernel(%arg0: i32, %arg1: memref<8x128xbf16, #tpu.memory_space<vmem>>, %arg2: memref<128x128xbf16, #tpu.memory_space<vmem>>, %arg3: memref<1x128xf32, #tpu.memory_space<vmem>>, %arg4: memref<128x128xbf16, #tpu.memory_space<vmem>>, %arg5: memref<1x128xf32, #tpu.memory_space<vmem>>, %arg6: memref<128x128xbf16, #tpu.memory_space<vmem>>, %arg7: memref<1x128xf32, #tpu.memory_space<vmem>>, %arg8: memref<8x128xf32, #tpu.memory_space<vmem>>, %arg9: memref<1x128xf32, #tpu.memory_space<vmem>>, %arg10: memref<1x128xf32, #tpu.memory_space<vmem>>, %arg11: memref<1x128xf32, #tpu.memory_space<vmem>>, %arg12: memref<1x128xf32, #tpu.memory_space<vmem>>) attributes {dimension_semantics = [#tpu.dimension_semantics<arbitrary>], iteration_bounds = array<i64: 2>, scalar_prefetch = 0 : i64, scratch_operands = 2 : i64, tpu.core_type = #tpu.core_type<tc>, window_params = [{transform_indices = @transform_0, window_bounds = array<i64: 8, 128>}, {pipeline_mode = #tpu.pipeline_mode<synchronous>, transform_indices = @transform_1, window_bounds = array<i64: 128, 128>}, {pipeline_mode = #tpu.pipeline_mode<synchronous>, transform_indices = @transform_2, window_bounds = array<i64: 1, 128>}, {pipeline_mode = #tpu.pipeline_mode<synchronous>, transform_indices = @transform_3, window_bounds = array<i64: 128, 128>}, {pipeline_mode = #tpu.pipeline_mode<synchronous>, transform_indices = @transform_4, window_bounds = array<i64: 1, 128>}, {pipeline_mode = #tpu.pipeline_mode<synchronous>, transform_indices = @transform_5, window_bounds = array<i64: 128, 128>}, {pipeline_mode = #tpu.pipeline_mode<synchronous>, transform_indices = @transform_6, window_bounds = array<i64: 1, 128>}, {transform_indices = @transform_7, window_bounds = array<i64: 8, 128>}, {pipeline_mode = #tpu.pipeline_mode<synchronous>, transform_indices = @transform_8, window_bounds = array<i64: 1, 128>}, {pipeline_mode = #tpu.pipeline_mode<synchronous>, transform_indices = @transform_9, window_bounds = array<i64: 1, 128>}]} {
    %c0_i32 = arith.constant 0 : i32
    %0 = arith.cmpi eq, %arg0, %c0_i32 : i32
    %1 = arith.extui %0 : i1 to i32
    %c0_i32_0 = arith.constant 0 : i32
    %2 = arith.cmpi ne, %1, %c0_i32_0 : i32
    scf.if %2 {
      %cst_32 = arith.constant -1.000000e+30 : f32
      %53 = vector.broadcast %cst_32 : f32 to vector<1x128xf32>
      %c0_33 = arith.constant 0 : index
      %c0_34 = arith.constant 0 : index
      %54 = vector.load %arg11[%c0_33, %c0_34] : memref<1x128xf32, #tpu.memory_space<vmem>>, vector<1x128xf32>
      tpu.vector_store %arg11[%c0_33, %c0_34], %53 {strides = array<i32>} : memref<1x128xf32, #tpu.memory_space<vmem>>, vector<1x128xf32>,
      %cst_35 = arith.constant 0.000000e+00 : f32
      %55 = vector.broadcast %cst_35 : f32 to vector<1x128xf32>
      %c0_36 = arith.constant 0 : index
      %c0_37 = arith.constant 0 : index
      %56 = vector.load %arg12[%c0_36, %c0_37] : memref<1x128xf32, #tpu.memory_space<vmem>>, vector<1x128xf32>
      tpu.vector_store %arg12[%c0_36, %c0_37], %55 {strides = array<i32>} : memref<1x128xf32, #tpu.memory_space<vmem>>, vector<1x128xf32>,
    } else {
    }
    %c0 = arith.constant 0 : index
    %c0_1 = arith.constant 0 : index
    %3 = vector.load %arg1[%c0, %c0_1] : memref<8x128xbf16, #tpu.memory_space<vmem>>, vector<8x128xbf16>
    %c0_2 = arith.constant 0 : index
    %c0_3 = arith.constant 0 : index
    %4 = vector.load %arg2[%c0_2, %c0_3] : memref<128x128xbf16, #tpu.memory_space<vmem>>, vector<128x128xbf16>
    %cst = arith.constant dense<0.000000e+00> : vector<8x128xf32>
    %5 = tpu.matmul %3, %4, %cst {dimension_numbers = #tpu.dot_dimension_numbers<[1], [0], [0], [1], [0, 0, 1, 1], [], []>} : vector<8x128xbf16>, vector<128x128xbf16>, vector<8x128xf32> -> vector<8x128xf32>
    %c0_4 = arith.constant 0 : index
    %c0_5 = arith.constant 0 : index
    %6 = vector.load %arg3[%c0_4, %c0_5] : memref<1x128xf32, #tpu.memory_space<vmem>>, vector<1x128xf32>
    %7 = vector.broadcast %6 : vector<1x128xf32> to vector<8x128xf32>
    %8 = arith.addf %5, %7 : vector<8x128xf32>
    %cst_6 = arith.constant 0.000000e+00 : f32
    %9 = vector.broadcast %cst_6 : f32 to vector<8x128xf32>
    %10 = arith.maximumf %8, %9 : vector<8x128xf32>
    %11 = arith.truncf %10 : vector<8x128xf32> to vector<8x128xbf16>
    %c0_7 = arith.constant 0 : index
    %c0_8 = arith.constant 0 : index
    %12 = vector.load %arg4[%c0_7, %c0_8] : memref<128x128xbf16, #tpu.memory_space<vmem>>, vector<128x128xbf16>
    %cst_9 = arith.constant dense<0.000000e+00> : vector<8x128xf32>
    %13 = tpu.matmul %11, %12, %cst_9 {dimension_numbers = #tpu.dot_dimension_numbers<[1], [0], [0], [1], [0, 0, 1, 1], [], []>} : vector<8x128xbf16>, vector<128x128xbf16>, vector<8x128xf32> -> vector<8x128xf32>
    %c0_10 = arith.constant 0 : index
    %c0_11 = arith.constant 0 : index
    %14 = vector.load %arg5[%c0_10, %c0_11] : memref<1x128xf32, #tpu.memory_space<vmem>>, vector<1x128xf32>
    %15 = vector.broadcast %14 : vector<1x128xf32> to vector<8x128xf32>
    %16 = arith.addf %13, %15 : vector<8x128xf32>
    %cst_12 = arith.constant 0.000000e+00 : f32
    %17 = vector.broadcast %cst_12 : f32 to vector<8x128xf32>
    %18 = arith.maximumf %16, %17 : vector<8x128xf32>
    %19 = arith.truncf %18 : vector<8x128xf32> to vector<8x128xbf16>
    %c0_13 = arith.constant 0 : index
    %c0_14 = arith.constant 0 : index
    %20 = vector.load %arg6[%c0_13, %c0_14] : memref<128x128xbf16, #tpu.memory_space<vmem>>, vector<128x128xbf16>
    %cst_15 = arith.constant dense<0.000000e+00> : vector<8x128xf32>
    %21 = tpu.matmul %19, %20, %cst_15 {dimension_numbers = #tpu.dot_dimension_numbers<[1], [0], [0], [1], [0, 0, 1, 1], [], []>} : vector<8x128xbf16>, vector<128x128xbf16>, vector<8x128xf32> -> vector<8x128xf32>
    %c0_16 = arith.constant 0 : index
    %c0_17 = arith.constant 0 : index
    %22 = vector.load %arg7[%c0_16, %c0_17] : memref<1x128xf32, #tpu.memory_space<vmem>>, vector<1x128xf32>
    %23 = vector.broadcast %22 : vector<1x128xf32> to vector<8x128xf32>
    %24 = arith.addf %21, %23 : vector<8x128xf32>
    %c8_i32 = arith.constant 8 : i32
    %25 = arith.muli %arg0, %c8_i32 : i32
    %26 = tpu.iota {dimensions = array<i32: 0>} : vector<8x128xi32>
    %27 = vector.broadcast %25 : i32 to vector<8x128xi32>
    %28 = arith.addi %27, %26 : vector<8x128xi32>
    %c12_i32 = arith.constant 12 : i32
    %29 = vector.broadcast %c12_i32 : i32 to vector<8x128xi32>
    %30 = arith.cmpi slt, %28, %29 : vector<8x128xi32>
    %cst_18 = arith.constant -1.000000e+30 : f32
    %31 = vector.broadcast %cst_18 : f32 to vector<8x128xf32>
    %32 = arith.select %30, %24, %31 : vector<8x128xi1>, vector<8x128xf32>
    %c0_19 = arith.constant 0 : index
    %c0_20 = arith.constant 0 : index
    %33 = vector.load %arg8[%c0_19, %c0_20] : memref<8x128xf32, #tpu.memory_space<vmem>>, vector<8x128xf32>
    tpu.vector_store %arg8[%c0_19, %c0_20], %32 {strides = array<i32>} : memref<8x128xf32, #tpu.memory_space<vmem>>, vector<8x128xf32>,
    %c0_21 = arith.constant 0 : index
    %c0_22 = arith.constant 0 : index
    %34 = vector.load %arg11[%c0_21, %c0_22] : memref<1x128xf32, #tpu.memory_space<vmem>>, vector<1x128xf32>
    %cst_23 = arith.constant dense<0xFF800000> : vector<128xf32>
    %35 = vector.multi_reduction <maximumf>, %32, %cst_23 [0] : vector<8x128xf32> to vector<128xf32>
    %36 = vector.shape_cast %35 : vector<128xf32> to vector<1x128xf32>
    %37 = arith.maximumf %34, %36 : vector<1x128xf32>
    %c0_24 = arith.constant 0 : index
    %c0_25 = arith.constant 0 : index
    %38 = vector.load %arg12[%c0_24, %c0_25] : memref<1x128xf32, #tpu.memory_space<vmem>>, vector<1x128xf32>
    %39 = arith.subf %34, %37 : vector<1x128xf32>
    %40 = math.exp %39 : vector<1x128xf32>
    %41 = arith.mulf %38, %40 : vector<1x128xf32>
    %42 = vector.broadcast %37 : vector<1x128xf32> to vector<8x128xf32>
    %43 = arith.subf %32, %42 : vector<8x128xf32>
    %44 = math.exp %43 : vector<8x128xf32>
    %cst_26 = arith.constant dense<0.000000e+00> : vector<128xf32>
    %45 = vector.multi_reduction <add>, %44, %cst_26 [0] : vector<8x128xf32> to vector<128xf32>
    %46 = vector.shape_cast %45 : vector<128xf32> to vector<1x128xf32>
    %47 = arith.addf %41, %46 : vector<1x128xf32>
    %c0_27 = arith.constant 0 : index
    %c0_28 = arith.constant 0 : index
    %48 = vector.load %arg12[%c0_27, %c0_28] : memref<1x128xf32, #tpu.memory_space<vmem>>, vector<1x128xf32>
    tpu.vector_store %arg12[%c0_27, %c0_28], %47 {strides = array<i32>} : memref<1x128xf32, #tpu.memory_space<vmem>>, vector<1x128xf32>,
    %c0_29 = arith.constant 0 : index
    %c0_30 = arith.constant 0 : index
    %49 = vector.load %arg11[%c0_29, %c0_30] : memref<1x128xf32, #tpu.memory_space<vmem>>, vector<1x128xf32>
    tpu.vector_store %arg11[%c0_29, %c0_30], %37 {strides = array<i32>} : memref<1x128xf32, #tpu.memory_space<vmem>>, vector<1x128xf32>,
    %c1_i32 = arith.constant 1 : i32
    %50 = arith.cmpi eq, %arg0, %c1_i32 : i32
    %51 = arith.extui %50 : i1 to i32
    %c0_i32_31 = arith.constant 0 : i32
    %52 = arith.cmpi ne, %51, %c0_i32_31 : i32
    scf.if %52 {
      %c0_32 = arith.constant 0 : index
      %c0_33 = arith.constant 0 : index
      %53 = vector.load %arg11[%c0_32, %c0_33] : memref<1x128xf32, #tpu.memory_space<vmem>>, vector<1x128xf32>
      %c0_34 = arith.constant 0 : index
      %c0_35 = arith.constant 0 : index
      %54 = vector.load %arg9[%c0_34, %c0_35] : memref<1x128xf32, #tpu.memory_space<vmem>>, vector<1x128xf32>
      tpu.vector_store %arg9[%c0_34, %c0_35], %53 {strides = array<i32>} : memref<1x128xf32, #tpu.memory_space<vmem>>, vector<1x128xf32>,
      %c0_36 = arith.constant 0 : index
      %c0_37 = arith.constant 0 : index
      %55 = vector.load %arg12[%c0_36, %c0_37] : memref<1x128xf32, #tpu.memory_space<vmem>>, vector<1x128xf32>
      %c0_38 = arith.constant 0 : index
      %c0_39 = arith.constant 0 : index
      %56 = vector.load %arg10[%c0_38, %c0_39] : memref<1x128xf32, #tpu.memory_space<vmem>>, vector<1x128xf32>
      tpu.vector_store %arg10[%c0_38, %c0_39], %55 {strides = array<i32>} : memref<1x128xf32, #tpu.memory_space<vmem>>, vector<1x128xf32>,
    } else {
    }
    return
  }
  func.func @transform_0(%arg0: i32) -> (i32, i32) {
    %c0_i32 = arith.constant 0 : i32
    %c0_i32_0 = arith.constant 0 : i32
    return %arg0, %c0_i32 : i32, i32
  }
  func.func @transform_1(%arg0: i32) -> (i32, i32) {
    %c0_i32 = arith.constant 0 : i32
    %c0_i32_0 = arith.constant 0 : i32
    %c0_i32_1 = arith.constant 0 : i32
    return %c0_i32, %c0_i32_0 : i32, i32
  }
  func.func @transform_2(%arg0: i32) -> (i32, i32) {
    %c0_i32 = arith.constant 0 : i32
    %c0_i32_0 = arith.constant 0 : i32
    %c0_i32_1 = arith.constant 0 : i32
    return %c0_i32, %c0_i32_0 : i32, i32
  }
  func.func @transform_3(%arg0: i32) -> (i32, i32) {
    %c0_i32 = arith.constant 0 : i32
    %c0_i32_0 = arith.constant 0 : i32
    %c0_i32_1 = arith.constant 0 : i32
    return %c0_i32, %c0_i32_0 : i32, i32
  }
  func.func @transform_4(%arg0: i32) -> (i32, i32) {
    %c0_i32 = arith.constant 0 : i32
    %c0_i32_0 = arith.constant 0 : i32
    %c0_i32_1 = arith.constant 0 : i32
    return %c0_i32, %c0_i32_0 : i32, i32
  }
  func.func @transform_5(%arg0: i32) -> (i32, i32) {
    %c0_i32 = arith.constant 0 : i32
    %c0_i32_0 = arith.constant 0 : i32
    %c0_i32_1 = arith.constant 0 : i32
    return %c0_i32, %c0_i32_0 : i32, i32
  }
  func.func @transform_6(%arg0: i32) -> (i32, i32) {
    %c0_i32 = arith.constant 0 : i32
    %c0_i32_0 = arith.constant 0 : i32
    %c0_i32_1 = arith.constant 0 : i32
    return %c0_i32, %c0_i32_0 : i32, i32
  }
  func.func @transform_7(%arg0: i32) -> (i32, i32) {
    %c0_i32 = arith.constant 0 : i32
    %c0_i32_0 = arith.constant 0 : i32
    return %arg0, %c0_i32 : i32, i32
  }
  func.func @transform_8(%arg0: i32) -> (i32, i32) {
    %c0_i32 = arith.constant 0 : i32
    %c0_i32_0 = arith.constant 0 : i32
    %c0_i32_1 = arith.constant 0 : i32
    return %c0_i32, %c0_i32_0 : i32, i32
  }
  func.func @transform_9(%arg0: i32) -> (i32, i32) {
    %c0_i32 = arith.constant 0 : i32
    %c0_i32_0 = arith.constant 0 : i32
    %c0_i32_1 = arith.constant 0 : i32
    return %c0_i32, %c0_i32_0 : i32, i32
  }
}

</mosaic_0001>

<bundles_post_ra>
// kernel: tpu_custom_call.1
= control target key start
LH: loop header
LB: loop body
LE: loop exit
PB: predicated region body
PF: predicated region fallthrough
CT: control target
= control target key end

     0   :  { %s1867_s0 = inlined_call_operand.hbm [shape: bf16[16,128], index: 0, kind: input, shape index: {}]   ;;  %s1868_s1 = inlined_call_operand.hbm [shape: bf16[128,128], index: 1, kind: input, shape index: {}]   ;;  %s1869_s2 = inlined_call_operand.vmem [shape: f32[1,128], index: 2, kind: input, shape index: {}]   ;;  %s1870_s3 = inlined_call_operand.hbm [shape: bf16[128,128], index: 3, kind: input, shape index: {}]   ;;  %s1871_s4 = inlined_call_operand.vmem [shape: f32[1,128], index: 4, kind: input, shape index: {}]   ;;  %s1872_s5 = inlined_call_operand.hbm [shape: bf16[128,128], index: 5, kind: input, shape index: {}]   ;;  %s1873_s6 = inlined_call_operand.vmem [shape: f32[1,128], index: 6, kind: input, shape index: {}]   ;;  %s1874_s7 = inlined_call_operand.hbm [shape: f32[16,128], index: 7, kind: output, shape index: {0}]   ;;  %s1875_s8 = inlined_call_operand.hbm [shape: f32[1,128], index: 8, kind: output, shape index: {1}]   ;;  %s1876_s9 = inlined_call_operand.hbm [shape: f32[1,128], index: 9, kind: output, shape index: {2}]  }
   0x1   :  { %1883 = sst [smem:[#allocation23_spill]] %s1876_s9 }
   0x2   :  { %15 = vsyncpa [#allocation5], 0 }
   0x3   :  { %17 = vsyncpa [#allocation5 + $0x1], 0 }
   0x4   :  { %18 = vsyncpa [#allocation8], 0 }
   0x5   :  { %19 = vsyncpa [#allocation11], 0 }
   0x6   :  { %20 = vsyncpa [#allocation6], 0 }
   0x7   :  { %22 = vsyncpa [#allocation6 + $0x1], 0 }
   0x8   :  { %23 = vsyncpa [#allocation14], 0  ;;  %s1509_s30 = smov 0   ;;  %s1511_s10 = smov 0  }
   0x9   :  { %s1513_s11 = smov 0   ;;  %s1515_s12 = smov 0  }
   0xa LB: > { %1884 = sst [smem:[#allocation21_spill]] %s1432_s30  ;;  %s1530_s13 = sadd.s32 4294967295, %s1444_s12   ;;  %s1444_s12 = sphi %s1515_s12, %s1917_s12   ;;  %s1440_s11 = sphi %s1513_s11, %s1916_s11   ;;  %s1436_s10 = sphi %s1511_s10, %s1915_s10   ;;  %s1432_s30 = sphi %s1509_s30, %s1914_s30  }
   0xb   : > { %s936_s14 = sadd.s32 4294967294, %s1444_s12   ;;  %p49_p0 = scmp.ne.s32.totalorder %s1436_s10, %s1432_s30 }
   0xc   : > { %p1877_p1 = scmp.eq.s32.totalorder %s1530_s13, 0  ;;  %p205_p3 = scmp.eq.s32.totalorder %s936_s14, 1 }
   0xd   : > { %p937_p5 = scmp.ge.s32.totalorder %s1444_s12, 1  ;;  %p254_p7 = scmp.lt.s32.totalorder %s1444_s12, 3 }
   0xe   : > { %p1539_p4 = por %p1877_p1, %p49_p0  ;;  %p1544_p6 = por %p205_p3, %p49_p0 }
   0xf   : > { %p1550_p9 = pnand %p937_p5, %p254_p7  ;;  %s1446_s18 = smov [#allocation7]  }
  0x10   : > { %s1885_s15 = scalar_select %p1539_p4, 1, 0 }
  0x11   : > { %s1886_s16 = scalar_select %p1544_p6, 1, 0 }
  0x12   : > { %s1888_s17 = scalar_select %p1550_p9, 1, 0 }
  0x13   : > { %1887 = sst [smem:[#allocation22_spill]] %s1886_s16  ;;  %s266_s19 = sshll.u32 %s1446_s18, 4  ;;  %s1554_s19 = int_to_ptr.vmem [resolvable:$true] %s266_s19 }
  0x14   : > { %p1099_p10 = pneg %p1550_p9  ;;  %s1447_s21 = smov [#allocation9]  }
  0x15   : > { %s282_s22 = sshll.u32 %s1447_s21, 4  ;;  %s1448_s23 = smov [#allocation10]   ;;  %s1565_s22 = int_to_ptr.vmem [resolvable:$true] %s282_s22 }
  0x16   : > { %p1561_p12 = pnand %p1099_p10, %p1877_p1  ;;  %s1567_s24 = sshll.u32 %s1448_s23, 4  ;;  %s299_s24 = int_to_ptr.vmem [resolvable:$true] %s1567_s24 }
  0x17   : > { %s1200_s27 = scalar_lea.hbm %s1868_s1, 1024 }
  0x18   : > { %p1201_p13 = scmp.ne.s32.totalorder %s1868_s1, %s1200_s27  ;;  %p1577_p0 = pneg %p1561_p12 }
  0x19   : > { %p1207_p7 = scmp.lt.u32.totalorder %s1200_s27, %s1868_s1 }
  0x1a   : > { %p1203_p3 = pnand %p1577_p0, %p1201_p13 }
  0x1c   : > { %p1204_p5 = pneg %p1203_p3 }
  0x1e   : > { %p1209_p10 = pnand %p1207_p7, %p1204_p5 }
  0x20   : > { %1212 = shalt.err (!%p1209_p10)
}
  0x21   : > { %s1213_s23 = scalar_lea.vmem %s1554_s19, 1024  ;;  %p1221_p2 = scmp.lt.s32.totalorder %s1554_s19, %s1554_s19 }
  0x22   : > { %p1214_p11 = scmp.ne.s32.totalorder %s1554_s19, %s1213_s23  ;;  %p1222_p6 = scmp.lt.s32.totalorder %s1213_s23, %s1213_s23 }
  0x24   : > { %p1216_p8 = pnand %p1214_p11, %p1577_p0  ;;  %p1223_p13 = por %p1222_p6, %p1221_p2 }
  0x26   : > { %p1217_p1 = pneg %p1216_p8 }
  0x28   : > { %p1224_p3 = pnand %p1223_p13, %p1217_p1 }
  0x2a   : > { %1227 = shalt.err (!%p1224_p3)
}
  0x2b   : > { %s1449_s25 = smov 64   ;;  %s1450_s26 = smov 4  }
  0x2c   : > { %1102 = dma.hbm_to_vmem [thread:$0]  (!%p1561_p12), %s1868_s1, 1024, %s1554_s19, [#allocation8], %s1449_s25, %s1449_s25, %s1450_s26  }
  0x2d   : > { %s1228_s21 = scalar_lea.hbm %s1870_s3, 1024 }
  0x2e   : > { %p1229_p1 = scmp.ne.s32.totalorder %s1870_s3, %s1228_s21  ;;  %p1235_p8 = scmp.lt.u32.totalorder %s1228_s21, %s1870_s3 }
  0x30   : > { %p1231_p2 = pnand %p1229_p1, %p1577_p0 }
  0x32   : > { %p1232_p6 = pneg %p1231_p2 }
  0x34   : > { %p1237_p11 = pnand %p1235_p8, %p1232_p6 }
  0x36   : > { %1240 = shalt.err (!%p1237_p11)
}
  0x37   : > { %s1241_s19 = scalar_lea.vmem %s1565_s22, 1024  ;;  %p1249_p13 = scmp.lt.s32.totalorder %s1565_s22, %s1565_s22 }
  0x38   : > { %p1242_p5 = scmp.ne.s32.totalorder %s1565_s22, %s1241_s19  ;;  %p1250_p3 = scmp.lt.s32.totalorder %s1241_s19, %s1241_s19 }
  0x3a   : > { %p1244_p7 = pnand %p1242_p5, %p1577_p0  ;;  %p1251_p1 = por %p1250_p3, %p1249_p13 }
  0x3c   : > { %p1245_p10 = pneg %p1244_p7 }
  0x3e   : > { %p1252_p2 = pnand %p1251_p1, %p1245_p10 }
  0x40   : > { %1255 = shalt.err (!%p1252_p2)
}
  0x41   : > { %1105 = dma.hbm_to_vmem [thread:$0]  (!%p1561_p12), %s1870_s3, 1024, %s1565_s22, [#allocation8], %s1449_s25, %s1449_s25, %s1450_s26  }
  0x42   : > { %s1256_s28 = scalar_lea.hbm %s1872_s5, 1024 }
  0x43   : > { %p1257_p6 = scmp.ne.s32.totalorder %s1872_s5, %s1256_s28  ;;  %p1263_p5 = scmp.lt.u32.totalorder %s1256_s28, %s1872_s5 }
  0x45   : > { %p1259_p8 = pnand %p1257_p6, %p1577_p0 }
  0x47   : > { %p1260_p11 = pneg %p1259_p8 }
  0x49   : > { %p1265_p7 = pnand %p1263_p5, %p1260_p11 }
  0x4b   : > { %1268 = shalt.err (!%p1265_p7)
}
  0x4c   : > { %s1269_s19 = scalar_lea.vmem %s299_s24, 1024  ;;  %p1277_p1 = scmp.lt.s32.totalorder %s299_s24, %s299_s24 }
  0x4d   : > { %p1270_p10 = scmp.ne.s32.totalorder %s299_s24, %s1269_s19  ;;  %p1278_p2 = scmp.lt.s32.totalorder %s1269_s19, %s1269_s19 }
  0x4f   : > { %p1272_p13 = pnand %p1270_p10, %p1577_p0  ;;  %p1279_p4 = por %p1278_p2, %p1277_p1 }
  0x51   : > { %p1273_p3 = pneg %p1272_p13 }
  0x53   : > { %p1280_p9 = pnand %p1279_p4, %p1273_p3 }
  0x55   : > { %1283 = shalt.err (!%p1280_p9)
}
  0x56   : > { %1108 = dma.hbm_to_vmem [thread:$0]  (!%p1561_p12), %s1872_s5, 1024, %s299_s24, [#allocation11], %s1449_s25, %s1449_s25, %s1450_s26  }
  0x57   : > { %s1650_s14 = sadd.s32 1, %s1444_s12   ;;  %s36_s30 = sadd.s32 1, %s1440_s11 }
  0x58   : > { %s33_s20 = ssub.s32 %s1444_s12, %s1650_s14  ;;  %p43_p9 = scmp.ne.s32.totalorder %s1440_s11, %s1436_s10 }
  0x59   : > { %p34_p4 = scmp.eq.s32.totalorder %s33_s20, 0  ;;  %p44_p0 = scmp.eq.s32.totalorder %s1444_s12, 0 }
  0x5a   : > { %p1120_p6 = scmp.lt.s32.totalorder %s1444_s12, 2  ;;  %p1891_p11 = scmp.eq.s32.totalorder %s1530_s13, 1 }
  0x5b   : > { %s1660_s16 = scalar_select %p34_p4, %s1440_s11, %s36_s30  }
  0x5c   : > { %p45_p8 = por %p44_p0, %p43_p9  ;;  %p1664_p5 = por %p1891_p11, %p43_p9 }
  0x5d   : > { %s315_s28 = sand.u32 1, %s1440_s11   ;;  %s943_s29 = sshll.u32 %s1444_s12, 6 }
  0x5e   : > { %s942_s24 = sshll.u32 %s315_s28, 2  ;;  %s1673_s18 = scalar_lea.hbm %s1867_s0, %s943_s29 }
  0x5f   : > { %s319_s21 = scalar_lea.vmem [#allocation4], %s942_s24  ;;  %p1675_p12 = pnand %p1120_p6, %p45_p8 }
  0x60   : > { %s326_s23 = sshll.u32 %s319_s21, 4  ;;  %s316_s22 = scalar_lea.sflag [#allocation5], %s315_s28  ;;  %s1679_s23 = int_to_ptr.vmem [resolvable:$true] %s326_s23 }
  0x61   : > { %s1284_s9 = scalar_lea.hbm %s1673_s18, 64  ;;  %p1286_p10 = pneg %p1675_p12 }
  0x62   : > { %p1285_p7 = scmp.ne.s32.totalorder %s1673_s18, %s1284_s9  ;;  %s1289_s29 = scalar_lea.hbm %s1867_s0, 128 }
  0x63   : > { %p1290_p1 = scmp.lt.u32.totalorder %s1673_s18, %s1867_s0  ;;  %p1291_p2 = scmp.lt.u32.totalorder %s1289_s29, %s1284_s9 }
  0x64   : > { %p1287_p13 = pnand %p1286_p10, %p1285_p7  ;;  %p1293_p9 = scmp.lt.u32.totalorder %s1284_s9, %s1673_s18 }
  0x65   : > { %p1292_p4 = por %p1291_p2, %p1290_p1 }
  0x66   : > { %p1288_p3 = pneg %p1287_p13 }
  0x67   : > { %p1294_p0 = por %p1293_p9, %p1292_p4 }
  0x69   : > { %p1295_p6 = pnand %p1294_p0, %p1288_p3 }
  0x6b   : > { %1298 = shalt.err (!%p1295_p6)
}
  0x6c   : > { %s1299_s28 = scalar_lea.vmem %s1679_s23, 64  ;;  %s1451_s26 = smov [#allocation4]  }
  0x6d   : > { %p1300_p8 = scmp.ne.s32.totalorder %s1679_s23, %s1299_s28  ;;  %s1304_s21 = sshll.u32 %s1451_s26, 4  ;;  %s1305_s21 = int_to_ptr.vmem [resolvable:$false] %s1304_s21 }
  0x6e   : > { %s1306_s20 = scalar_lea.vmem %s1305_s21, 128  ;;  %p1307_p13 = scmp.lt.s32.totalorder %s1679_s23, %s1305_s21 }
  0x6f   : > { %p1302_p11 = pnand %p1300_p8, %p1286_p10  ;;  %p1308_p1 = scmp.lt.s32.totalorder %s1306_s20, %s1299_s28 }
  0x71   : > { %p1303_p7 = pneg %p1302_p11  ;;  %p1309_p2 = por %p1308_p1, %p1307_p13 }
  0x73   : > { %p1310_p4 = pnand %p1309_p2, %p1303_p7 }
  0x75   : > { %1313 = shalt.err (!%p1310_p4)
}
  0x76   : > { %1112 = dma.hbm_to_vmem [thread:$0]  (!%p1675_p12), %s1673_s18, 64, %s1679_s23, %s316_s22  }
  0x77   : > { %p1894_p3 = scmp.ne.s32.totalorder %s1888_s17, 0 }
  0x78   : > { %s1709_s9 = sand.u32 (!%p1894_p3), 1, %s1436_s10   ;;  %p1895_p10 = scmp.ne.s32.totalorder (!%p1894_p3), %s1885_s15, 0 }
  0x79   : > { %335 = sbr.rel (%p1894_p3) target bundleno = 964 (0x3c4), region = 48  ;;  %s945_s30 = sshll.u32 (!%p1894_p3), %s1709_s9, 2 }
  0x7a   : > { %s338_s29 = scalar_lea.sflag (!%p1894_p3), [#allocation5], %s1709_s9  ;;  %s1713_s24 = scalar_lea.vmem (!%p1894_p3), [#allocation4], %s945_s30 }
  0x80   : > { %1411 = dma.done.wait (%p1895_p10), %s338_s29, 64  }
  0x81   : > { %1413 = vsyncadd (%p1895_p10), %s338_s29, 4294967232  ;;  %p1896_p12 = scmp.eq.s32.totalorder %s1530_s13, 0 }
  0x83   : > { %1415 = dma.done.wait (%p1896_p12), [#allocation8], 2048   ;;  %p1897_p9 = pmov %p1896_p12 }
  0x85   : > { %1417 = vsyncadd (%p1897_p9), [#allocation8], 4294965248  ;;  %p1898_p0 = pmov %p1897_p9 }
  0x87   : > { %1419 = dma.done.wait (%p1898_p0), [#allocation11], 1024   ;;  %p1899_p6 = pmov %p1898_p0 }
  0x88   : > { %s949_s17 = sshll.u32 %s1709_s9, 3  ;;  %p1900_p8 = scmp.ne.s32.totalorder %s1530_s13, 0 }
  0x89   : > { %1421 = vsyncadd (%p1899_p6), [#allocation11], 4294966272  ;;  %s1728_s18 = scalar_lea.vmem [#allocation12], %s949_s17  ;;  %v1452_v0 = vmov (!%p1900_p8), -1e+30   ;;  %v1453_v1 = vmov (!%p1900_p8), 0.0  }
  0x8a   : > { %392 = sbr.rel (%p1900_p8) target bundleno = 145 (0x91), region = 68  ;;  %393 = vst [vmem:[#allocation2] sm:$0x1] (!%p1900_p8), %v1452_v0  ;;  %394 = vst [vmem:[#allocation3] sm:$0x1] (!%p1900_p8), %v1453_v1 }
  0x91 PF: > { %v1172_v2 = vld [vmem:[#allocation7] sm:$0xff]   ;;  %v1454_v3 = vmov 0.0   ;;  %v1173_v4 = vld [vmem:[#allocation7 + $0x8] sm:$0xff]   ;;  %vm1455_vm0 = vmmov 0   ;;  %v1174_v5 = vld [vmem:[#allocation7 + $0x10] sm:$0xff]   ;;  %v734_v44 = vlaneseq  ;;  %s978_s25 = sshll.u32 %s1530_s13, 3 }
  0x92   : > { %1015 = vmatprep.subr.bf16.mxu0 %v1454_v3  ;;  %1035 = vmatprep.subr.bf16.mxu1 %v1454_v3  ;;  %v1180_v6 = vld [vmem:[#allocation9] sm:$0xff]   ;;  %v1175_v7 = vld [vmem:[#allocation7 + $0x18] sm:$0xff]   ;;  %v1181_v8 = vld [vmem:[#allocation9 + $0x8] sm:$0xff]   ;;  %v736_v46 = vstv %s978_s25  ;;  %p979_p11 = scmp.ne.s32.totalorder %s1530_s13, 1 }
  0x93   : > { %1016 = vmatpush3.bf16.msra.mxu0 %v1172_v2  ;;  %1031 = vmatprep.mubr.msk.bf16.mxu0 %vm1455_vm0, %v1454_v3  ;;  %v1176_v9 = vld [vmem:[#allocation7 + $0x20] sm:$0xff]   ;;  %v1182_v10 = vld [vmem:[#allocation9 + $0x10] sm:$0xff]   ;;  %v1177_v11 = vld [vmem:[#allocation7 + $0x28] sm:$0xff]   ;;  %v735_v45 = vshrl.u32 %v734_v44, 7 }
  0x94   : > { %1017 = vmatprep.subr.bf16.mxu0 %v1454_v3  ;;  %1051 = vmatprep.mubr.msk.bf16.mxu1 %vm1455_vm0, %v1454_v3  ;;  %v1183_v12 = vld [vmem:[#allocation9 + $0x18] sm:$0xff]   ;;  %v1178_v13 = vld [vmem:[#allocation7 + $0x30] sm:$0xff]   ;;  %v1184_v14 = vld [vmem:[#allocation9 + $0x20] sm:$0xff]  }
  0x95   : > { %1036 = vmatpush3.bf16.msra.mxu1 %v1180_v6  ;;  %v1179_v15 = vld [vmem:[#allocation7 + $0x38] sm:$0xff]   ;;  %v1185_v16 = vld [vmem:[#allocation9 + $0x28] sm:$0xff]   ;;  %v1186_v18 = vld [vmem:[#allocation9 + $0x30] sm:$0xff]   ;;  %v737_v47 = vadd.s32 %v736_v46, %v735_v45  ;;  %v757_v62 = vsub.s32 0, %v735_v45 }
  0x96   : > { %1037 = vmatprep.subr.bf16.mxu1 %v1454_v3  ;;  %v395_v17 = vld [vmem:[%s1713_s24] sm:$0xf]  ;;  %v1188_v20 = vld [vmem:[#allocation10] sm:$0xff]   ;;  %v1189_v21 = vld [vmem:[#allocation10 + $0x8] sm:$0xff]  }
  0x97   : > { %1018 = vmatpush3.bf16.msra.mxu0 %v1173_v4  ;;  %v1187_v19 = vld [vmem:[#allocation9 + $0x38] sm:$0xff]   ;;  %v1190_v22 = vld [vmem:[#allocation10 + $0x10] sm:$0xff]   ;;  %v1192_v24 = vld [vmem:[#allocation10 + $0x20] sm:$0xff]   ;;  %vm738_vm1 = vcmp.lt.s32.totalorder %v737_v47, 12 }
  0x98   : > { %1019 = vmatprep.subr.bf16.mxu0 %v1454_v3  ;;  %v1191_v23 = vld [vmem:[#allocation10 + $0x18] sm:$0xff]   ;;  %v1193_v25 = vld [vmem:[#allocation10 + $0x28] sm:$0xff]   ;;  %v951_v26 = vld [vmem:[%s1869_s2] ss:$0 sm:$0xff] }
  0x99   : > { %1038 = vmatpush3.bf16.msra.mxu1 %v1181_v8  ;;  %v1194_v34 = vld [vmem:[#allocation10 + $0x30] sm:$0xff]   ;;  %v1195_v35 = vld [vmem:[#allocation10 + $0x38] sm:$0xff]  }
  0x9a   : > { %1039 = vmatprep.subr.bf16.mxu1 %v1454_v3  ;;  %v960_v36 = vld [vmem:[%s1871_s4] ss:$0 sm:$0xff] }
  0x9b   : > { %1020 = vmatpush3.bf16.msra.mxu0 %v1174_v5  ;;  %v969_v48 = vld [vmem:[%s1873_s6] ss:$0 sm:$0xff] }
  0x9c   : > { %1021 = vmatprep.subr.bf16.mxu0 %v1454_v3  ;;  %v741_v60 = vld [vmem:[#allocation2] sm:$0x1] }
  0x9d   : > { %1040 = vmatpush3.bf16.msra.mxu1 %v1182_v10 }
  0x9e   : > { %1041 = vmatprep.subr.bf16.mxu1 %v1454_v3 }
  0x9f   : > { %1022 = vmatpush3.bf16.msra.mxu0 %v1175_v7 }
  0xa0   : > { %1023 = vmatprep.subr.bf16.mxu0 %v1454_v3 }
  0xa1   : > { %1042 = vmatpush3.bf16.msra.mxu1 %v1183_v12 }
  0xa2   : > { %1043 = vmatprep.subr.bf16.mxu1 %v1454_v3 }
  0xa3   : > { %1024 = vmatpush3.bf16.msra.mxu0 %v1176_v9 }
  0xa4   : > { %1025 = vmatprep.subr.bf16.mxu0 %v1454_v3 }
  0xa5   : > { %1044 = vmatpush3.bf16.msra.mxu1 %v1184_v14 }
  0xa6   : > { %1045 = vmatprep.subr.bf16.mxu1 %v1454_v3 }
  0xa7   : > { %1026 = vmatpush3.bf16.msra.mxu0 %v1177_v11  ;;  %v749_v11 = vld [vmem:[#allocation3] sm:$0x1] }
  0xa8   : > { %1027 = vmatprep.subr.bf16.mxu0 %v1454_v3 }
  0xa9   : > { %1046 = vmatpush3.bf16.msra.mxu1 %v1185_v16 }
  0xaa   : > { %1047 = vmatprep.subr.bf16.mxu1 %v1454_v3 }
  0xab   : > { %1028 = vmatpush3.bf16.msra.mxu0 %v1178_v13 }
  0xac   : > { %1029 = vmatprep.subr.bf16.mxu0 %v1454_v3 }
  0xad   : > { %1048 = vmatpush3.bf16.msra.mxu1 %v1186_v18 }
  0xae   : > { %1049 = vmatprep.subr.bf16.mxu1 %v1454_v3 }
  0xaf   : > { %1030 = vmatpush3.bf16.msra.mxu0 %v1179_v15 }
  0xb0   : > { %1055 = vmatprep.subr.bf16.mxu0 %v1454_v3 }
  0xb1   : > { %1050 = vmatpush3.bf16.msra.mxu1 %v1187_v19 }
  0xb2   : > { %1032 = vmatmul.mubr.bf16.vlgmr.msra.gmra.mrb[0].mxu0 %v395_v17 }
  0xb3   : > { %1071 = vmatprep.mubr.msk.bf16.mxu0 %vm1455_vm0, %v1454_v3  ;;  %1056 = vmatpush3.bf16.msra.mxu0 %v1188_v20 }
  0xb4   : > { %1057 = vmatprep.subr.bf16.mxu0 %v1454_v3 }
  0xb7   : > { %1058 = vmatpush3.bf16.msra.mxu0 %v1189_v21 }
  0xb8   : > { %1059 = vmatprep.subr.bf16.mxu0 %v1454_v3 }
  0xbb   : > { %1060 = vmatpush3.bf16.msra.mxu0 %v1190_v22 }
  0xbc   : > { %1061 = vmatprep.subr.bf16.mxu0 %v1454_v3 }
  0xbf   : > { %1062 = vmatpush3.bf16.msra.mxu0 %v1191_v23 }
  0xc0   : > { %1063 = vmatprep.subr.bf16.mxu0 %v1454_v3 }
  0xc3   : > { %1064 = vmatpush3.bf16.msra.mxu0 %v1192_v24 }
  0xc4   : > { %1065 = vmatprep.subr.bf16.mxu0 %v1454_v3 }
  0xc7   : > { %1066 = vmatpush3.bf16.msra.mxu0 %v1193_v25 }
  0xc8   : > { %1067 = vmatprep.subr.bf16.mxu0 %v1454_v3 }
  0xcb   : > { %1068 = vmatpush3.bf16.msra.mxu0 %v1194_v34 }
  0xcc   : > { %1069 = vmatprep.subr.bf16.mxu0 %v1454_v3 }
  0xcf   : > { %1070 = vmatpush3.bf16.msra.mxu0 %v1195_v35 }
 0x185   : > { %v501_v27 = vpop.f32.mrb[0].mxu0 }
 0x186   : > { %v502_v28 = vadd.f32 %v951_v26, %v501_v27  ;;  %v1033_v29 = vpop.f32.mrb[1].mxu0 }
 0x187   : > { %v504_v30 = vpop.f32.mrb[2].mxu0 }
 0x188   : > { %v507_v31 = vmax.f32 %v502_v28, 0.0  ;;  %v1034_v32 = vpop.f32.mrb[3].mxu0 }
 0x18a   : > { %v508_v33 = vpack.c.bf16 %v507_v31, %v507_v31 }
 0x18c   : > { %1052 = vmatmul.mubr.bf16.vlgmr.msra.gmra.mrb[0].mxu1 %v508_v33 }
 0x25f   : > { %v614_v37 = vpop.f32.mrb[0].mxu1 }
 0x260   : > { %v615_v38 = vadd.f32 %v960_v36, %v614_v37  ;;  %v1053_v39 = vpop.f32.mrb[1].mxu1 }
 0x261   : > { %v617_v40 = vpop.f32.mrb[2].mxu1 }
 0x262   : > { %v620_v41 = vmax.f32 %v615_v38, 0.0  ;;  %v1054_v42 = vpop.f32.mrb[3].mxu1 }
 0x264   : > { %v621_v43 = vpack.c.bf16 %v620_v41, %v620_v41 }
 0x266   : > { %1072 = vmatmul.mubr.bf16.vlgmr.msra.gmra.mrb[4].mxu0 %v621_v43 }
 0x339   : > { %v727_v49 = vpop.f32.mrb[4].mxu0 }
 0x33a   : > { %v728_v50 = vadd.f32 %v969_v48, %v727_v49  ;;  %v1073_v51 = vpop.f32.mrb[5].mxu0 }
 0x33b   : > { %v730_v52 = vpop.f32.mrb[6].mxu0 }
 0x33c   : > { %v739_v53 = vsel %vm738_vm1, %v728_v50, -1e+30  ;;  %v1074_v54 = vpop.f32.mrb[7].mxu0 }
 0x33d   : > { %740 = vst [vmem:[%s1728_s18] sm:$0xff] %v739_v53  ;;  %v742_v55 = vrot.slane %v739_v53, 4 }
 0x33f   : > { %v743_v56 = vmax.f32 %v739_v53, %v742_v55 }
 0x341   : > { %v744_v57 = vrot.slane %v743_v56, 2 }
 0x343   : > { %v745_v58 = vmax.f32 %v743_v56, %v744_v57 }
 0x345   : > { %v746_v59 = vrot.slane %v745_v58, 1 }
 0x347   : > { %v747_v61 = vmax.f32 %v745_v58, %v746_v59 }
 0x349   : > { %v748_v63 = vmax.f32 %v741_v60, %v747_v61 }
 0x34b   : > { %v758_v0 = vrot.slane %v748_v63, %v757_v62  ;;  %771 = vst [vmem:[#allocation2] sm:$0x1] %v748_v63  ;;  %v750_v3 = vsub.f32 %v741_v60, %v748_v63 }
 0x34d   : > { %v760_v1 = vsub.f32 %v739_v53, %v758_v0  ;;  %v751_v4 = vmul.f32 1.442695, %v750_v3 }
 0x34f   : > { %v761_v2 = vmul.f32 1.442695, %v760_v1 }
 0x351   : > { %1196 = vpow2.f32 %v761_v2 }
 0x352   : > { %1198 = vpow2.f32 %v751_v4  ;;  %v776_v16 = vld [vmem:[#allocation2] sm:$0x1] (!%p979_p11) }
 0x353   : > { %777 = vst [vmem:[#allocation13] sm:$0x1] (!%p979_p11), %v776_v16 }
 0x35b   : > { %v1197_v5 = vpop.eup %1196 }
 0x35c   : > { %v763_v6 = vrot.slane %v1197_v5, 4  ;;  %v1199_v10 = vpop.eup %1198 }
 0x35d   : > { %v753_v13 = vmul.f32 %v1199_v10, %v749_v11 }
 0x35e   : > { %v764_v7 = vadd.f32 %v1197_v5, %v763_v6 }
 0x360   : > { %v765_v8 = vrot.slane %v764_v7, 2 }
 0x362   : > { %v766_v9 = vadd.f32 %v765_v8, %v764_v7 }
 0x364   : > { %v767_v12 = vrot.slane %v766_v9, 1  ;;  %775 = sbr.rel (%p979_p11) target bundleno = 883 (0x373), region = 72 }
 0x366   : > { %v768_v14 = vadd.f32 %v767_v12, %v766_v9 }
 0x368   : > { %v769_v15 = vadd.f32 %v768_v14, %v753_v13 }
 0x36a   : > { %770 = vst [vmem:[#allocation3] sm:$0x1] %v769_v15 }
 0x371   : > { %v778_v17 = vld [vmem:[#allocation3] sm:$0x1] }
 0x372   : > { %779 = vst [vmem:[#allocation15] sm:$0x1] %v778_v17 }
 0x373 PF: > { %s1456_s21 = smov [#allocation13]   ;;  %s981_s30 = sshll.u32 %s1530_s13, 7 }
 0x374   : > { %s805_s20 = sshll.u32 %s1456_s21, 4  ;;  %s1779_s17 = scalar_lea.hbm %s1874_s7, %s981_s30  ;;  %s806_s20 = int_to_ptr.vmem [resolvable:$true] %s805_s20 }
 0x375   : > { %s1314_s15 = scalar_lea.vmem %s806_s20, 16  ;;  %p1901_p13 = scmp.eq.s32.totalorder %s1530_s13, 1 }
 0x376   : > { %p1315_p7 = scmp.ne.s32.totalorder %s806_s20, %s1314_s15  ;;  %s1320_s23 = scalar_lea.vmem %s806_s20, 32 }
 0x377   : > { %p1321_p4 = scmp.lt.s32.totalorder %s806_s20, %s806_s20  ;;  %p1322_p3 = scmp.lt.s32.totalorder %s1320_s23, %s1314_s15 }
 0x378   : > { %p1316_p1 = pnand %p1315_p7, %p1901_p13 }
 0x379   : > { %p1323_p10 = por %p1322_p3, %p1321_p4 }
 0x37a   : > { %p1317_p2 = pneg %p1316_p1 }
 0x37c   : > { %p1324_p12 = pnand %p1323_p10, %p1317_p2 }
 0x37e   : > { %1327 = shalt.err (!%p1324_p12)
}
 0x37f   : > { %s1328_s25 = scalar_lea.hbm %s1875_s8, 16  ;;  %p1902_p0 = pmov %p1901_p13 }
 0x380   : > { %p1329_p9 = scmp.ne.s32.totalorder %s1875_s8, %s1328_s25  ;;  %p1334_p11 = scmp.lt.u32.totalorder %s1328_s25, %s1875_s8 }
 0x382   : > { %p1330_p6 = pnand %p1329_p9, %p1902_p0 }
 0x384   : > { %p1331_p8 = pneg %p1330_p6 }
 0x386   : > { %p1336_p7 = pnand %p1334_p11, %p1331_p8 }
 0x388   : > { %1339 = shalt.err (!%p1336_p7)
}
 0x389   : > { %p1903_p13 = pmov %p1902_p0  ;;  %s794_s15 = sshll.u32 %s1728_s18, 4  ;;  %s1800_s15 = int_to_ptr.vmem [resolvable:$true] %s794_s15 }
 0x38a   : > { %s1457_s23 = smov [#allocation15]   ;;  %s781_s22 = scalar_lea.sflag [#allocation6], %s1709_s9 }
 0x38b   : > { %1091 = dma.vmem_to_hbm [thread:$0]  (%p1903_p13), %s806_s20, 16, %s1875_s8, [#allocation14]  }
 0x38c   : > { %s1802_s19 = sshll.u32 %s1457_s23, 4  ;;  %s1340_s25 = scalar_lea.vmem %s1800_s15, 128  ;;  %s817_s19 = int_to_ptr.vmem [resolvable:$true] %s1802_s19 }
 0x38d   : > { %p1341_p1 = scmp.ne.s32.totalorder %s1800_s15, %s1340_s25  ;;  %s1458_s28 = smov [#allocation12]  }
 0x38e   : > { %s1344_s26 = sshll.u32 %s1458_s28, 4  ;;  %s1345_s26 = int_to_ptr.vmem [resolvable:$false] %s1344_s26 }
 0x38f   : > { %p1342_p2 = pnand %p1341_p1, %p1664_p5  ;;  %s1346_s21 = scalar_lea.vmem %s1345_s26, 256 }
 0x390   : > { %p1347_p3 = scmp.lt.s32.totalorder %s1800_s15, %s1345_s26  ;;  %p1348_p10 = scmp.lt.s32.totalorder %s1346_s21, %s1340_s25 }
 0x391   : > { %p1343_p4 = pneg %p1342_p2 }
 0x392   : > { %p1349_p12 = por %p1348_p10, %p1347_p3 }
 0x394   : > { %p1350_p9 = pnand %p1349_p12, %p1343_p4 }
 0x396   : > { %1353 = shalt.err (!%p1350_p9)
}
 0x397   : > { %s1354_s9 = scalar_lea.hbm %s1779_s17, 128  ;;  %s1358_s30 = scalar_lea.hbm %s1874_s7, 256 }
 0x398   : > { %p1355_p0 = scmp.ne.s32.totalorder %s1779_s17, %s1354_s9  ;;  %p1359_p11 = scmp.lt.u32.totalorder %s1779_s17, %s1874_s7 }
 0x399   : > { %p1360_p7 = scmp.lt.u32.totalorder %s1358_s30, %s1354_s9  ;;  %p1362_p1 = scmp.lt.u32.totalorder %s1354_s9, %s1779_s17 }
 0x39a   : > { %p1356_p6 = pnand %p1355_p0, %p1664_p5 }
 0x39b   : > { %p1361_p13 = por %p1360_p7, %p1359_p11 }
 0x39c   : > { %p1357_p8 = pneg %p1356_p6 }
 0x39d   : > { %p1363_p2 = por %p1362_p1, %p1361_p13 }
 0x39f   : > { %p1364_p4 = pnand %p1363_p2, %p1357_p8 }
 0x3a1   : > { %1367 = shalt.err (!%p1364_p4)
}
 0x3a2   : > { %1089 = dma.vmem_to_hbm [thread:$0]  (%p1664_p5), %s1800_s15, 128, %s1779_s17, %s781_s22  }
 0x3a3   : > { %s1368_s23 = scalar_lea.vmem %s817_s19, 16  ;;  %p1904_p10 = scmp.eq.s32.totalorder %s1530_s13, 1 }
 0x3a4   : > { %p1369_p3 = scmp.ne.s32.totalorder %s817_s19, %s1368_s23  ;;  %s1374_s25 = scalar_lea.vmem %s817_s19, 32 }
 0x3a5   : > { %p1375_p0 = scmp.lt.s32.totalorder %s817_s19, %s817_s19  ;;  %p1376_p6 = scmp.lt.s32.totalorder %s1374_s25, %s1368_s23 }
 0x3a6   : > { %p1370_p12 = pnand %p1369_p3, %p1904_p10 }
 0x3a7   : > { %p1377_p11 = por %p1376_p6, %p1375_p0 }
 0x3a8   : > { %p1371_p9 = pneg %p1370_p12 }
 0x3aa   : > { %p1378_p7 = pnand %p1377_p11, %p1371_p9 }
 0x3ac   : > { %1381 = shalt.err (!%p1378_p7)
}
 0x3ad   : > { %s1905_s27 = sld [smem:[#allocation23_spill]]  ;;  %p1906_p8 = pmov %p1904_p10 }
 0x3b3   : > { %s1382_s21 = scalar_lea.hbm %s1905_s27, 16 }
 0x3b4   : > { %p1383_p5 = scmp.ne.s32.totalorder %s1905_s27, %s1382_s21  ;;  %p1388_p2 = scmp.lt.u32.totalorder %s1382_s21, %s1905_s27 }
 0x3b6   : > { %p1384_p13 = pnand %p1383_p5, %p1906_p8 }
 0x3b8   : > { %p1385_p1 = pneg %p1384_p13 }
 0x3ba   : > { %p1390_p4 = pnand %p1388_p2, %p1385_p1 }
 0x3bc   : > { %1393 = shalt.err (!%p1390_p4)
}
 0x3bd   : > { %p1907_p3 = pmov %p1906_p8 }
 0x3bf   : > { %1093 = dma.vmem_to_hbm [thread:$0]  (%p1907_p3), %s817_s19, 16, %s1905_s27, [#allocation14]  }
 0x3c0   : > { %p1908_p10 = pmov %p1907_p3 }
 0x3c1   : > { %p1909_p12 = pmov %p1907_p3 }
 0x3c2   : > { %1423 = dma.done.wait (%p1908_p10), [#allocation14], 32  }
 0x3c3   : > { %1425 = vsyncadd (%p1909_p12), [#allocation14], 4294967264 }
 0x3c4 PF: > { %s1910_s30 = sld [smem:[#allocation21_spill]]  ;;  %s1911_s29 = sld [smem:[#allocation22_spill]] }
 0x3c5   : > { %p1913_p0 = scmp.ge.s32.totalorder %s1444_s12, 2 }
 0x3ca   : > { %s836_s24 = sand.u32 1, %s1910_s30   ;;  %p1912_p9 = scmp.ne.s32.totalorder %s1911_s29, 0 }
 0x3cb   : > { %s837_s23 = scalar_lea.sflag [#allocation6], %s836_s24 }
 0x3cc   : > { %p1114_p6 = pnand %p1913_p0, %p1912_p9 }
 0x3ce   : > { %1427 = dma.done.wait (!%p1114_p6), %s837_s23, 128  }
 0x3cf   : > { %1429 = vsyncadd (!%p1114_p6), %s837_s23, 4294967168  ;;  %p26_p11 = scmp.ge.s32.totalorder %s1650_s14, 4   ;;  %s1914_s30 = smov %s1436_s10 }
 0x3d0   : > { %s1915_s10 = smov %s1440_s11  ;;  %s1916_s11 = smov %s1660_s16 }
 0x3d1   : > { %s1917_s12 = smov %s1650_s14  ;;  %28 = sbr.rel (!%p26_p11) target bundleno = 10 (0xa), region = 129 }
 0x3d8   :  { %842 = vsyncpa [#allocation5], 1 }
 0x3d9   :  { %844 = vsyncpa [#allocation5 + $0x1], 1 }
 0x3da   :  { %845 = vsyncpa [#allocation8], 1 }
 0x3db   :  { %846 = vsyncpa [#allocation11], 1 }
 0x3dc   :  { %847 = vsyncpa [#allocation6], 1 }
 0x3dd   :  { %849 = vsyncpa [#allocation6 + $0x1], 1 }
 0x3de   :  { %850 = vsyncpa [#allocation14], 1 }

</bundles_post_ra>
